<compile_context>
chip_gen: v7x
topology: tpu7x:2x2x1
jax: 0.10.0
libtpu: 0.0.40
codegen_flags: <defaults>
</compile_context>

<pallas_src>
import math

import jax
import jax.numpy as jnp
from jax import lax
from jax.experimental import pallas as pl
from jax.experimental.pallas import tpu as pltpu


def B(rho):
    return 0.0 if rho == 1 else (math.sqrt(1.0 - (rho - 1.0) ** 2) - 1.0) / (rho - 1.0)


# --- model hyperparameters ---
RHO = 1.5
B_CONST = B(RHO)          # ABReLU negative-side slope
INP_DIM = 32
HDIMS = [64, 64]
H_PAD = 128               # hidden feature dims padded to full lane width
BATCH = 8

# TODO(synk): only the default constructor path is implemented (bias=False,
# piecewise_linear nonlinearity, non-symmetric input weights, normal readout).


def densenet2_kernel(x_ref, w1_ref, w2_ref, wr_ref, out_ref):
    b = jnp.float32(B_CONST)

    # layer 1: Linear + ABReLU (single-select form; identical to b*min+max)
    h = jnp.dot(x_ref[...], w1_ref[...], preferred_element_type=jnp.float32)
    h = jnp.where(h > 0, h, b * h)

    # layer 2: Linear + ABReLU
    h = jnp.dot(h, w2_ref[...], preferred_element_type=jnp.float32)
    h = jnp.where(h > 0, h, b * h)

    # readout, feature-major: contract the feature axis of wr (1,H) against the
    # feature axis of h (tb,H)  ->  (1, tb) lane-dense row (same pattern as the
    # q·k^T contraction in flash attention).
    y = lax.dot_general(wr_ref[...], h, (((1,), (1,)), ((), ())),
                        preferred_element_type=jnp.float32)
    out_ref[0] = y


def prepare_params(w1, w2, wr):
    """One-time prep (outside the hot path): transpose the two hidden-layer
    PyTorch (out,in) weights to (in,out) and zero-pad hidden dims 64 -> 128.
    Padding is exact (ABReLU(0)=0, padded rows/cols are 0).  The readout stays
    a single (1, H_PAD) row — no (128,128) pad."""
    w1p = jnp.zeros((INP_DIM, H_PAD), jnp.float32).at[:, : HDIMS[0]].set(w1.T)
    w2p = jnp.zeros((H_PAD, H_PAD), jnp.float32).at[: HDIMS[0], : HDIMS[1]].set(w2.T)
    wrp = jnp.zeros((1, H_PAD), jnp.float32).at[:, : HDIMS[1]].set(wr)
    return w1p, w2p, wrp


def _round_up(a, m):
    return -(-a // m) * m


def densenet2_forward(x, w1p, w2p, wrp, *, block_b=512):
    """x: (B, INP_DIM) f32; w*p: prepared weights from prepare_params.
    Returns (B,) f32."""
    batch = x.shape[0]
    # grid = number of batch tiles (no wrapper-side jnp.pad; the partial last
    # block is handled by Pallas, and its garbage rows are sliced off below —
    # rows are fully independent, nothing reduces across batch in the kernel).
    grid = max(1, pl.cdiv(batch, block_b))
    # Keep the output lane dim a multiple of 128 for unmasked stores once the
    # batch is big enough; tiny batches just use a sublane-rounded tile.
    lane = 128 if batch >= 128 else 8
    tb = _round_up(pl.cdiv(batch, grid), lane)

    out = pl.pallas_call(
        densenet2_kernel,
        out_shape=jax.ShapeDtypeStruct((grid, 1, tb), jnp.float32),
        grid=(grid,),
        in_specs=[
            pl.BlockSpec((tb, INP_DIM), lambda i: (i, 0)),
            pl.BlockSpec((INP_DIM, H_PAD), lambda i: (0, 0)),
            pl.BlockSpec((H_PAD, H_PAD), lambda i: (0, 0)),
            pl.BlockSpec((1, H_PAD), lambda i: (0, 0)),
        ],
        out_specs=pl.BlockSpec((1, 1, tb), lambda i: (i, 0, 0)),
        compiler_params=pltpu.CompilerParams(dimension_semantics=("parallel",)),
    )(x, w1p, w2p, wrp)
    # contiguous flatten + slice (no strided column gather).
    return out.reshape(-1)[:batch]


def init_params(key):
    """Deterministic init matching the PyTorch __init__ (piecewise_linear path)."""
    k1, k2, k3 = jax.random.split(key, 3)
    g = [1.0] * (len(HDIMS) + 1)
    std1 = g[0] * math.sqrt(1.0 / ((B_CONST - 1.0) ** 2 * INP_DIM))
    std2 = g[1] * math.sqrt(1.0 / ((B_CONST - 1.0) ** 2 * HDIMS[0]))
    stdr = g[2] * math.sqrt(1.0 / ((B_CONST - 1.0) ** 2 * HDIMS[1]))
    w1 = std1 * jax.random.normal(k1, (HDIMS[0], INP_DIM), dtype=jnp.float32)
    w2 = std2 * jax.random.normal(k2, (HDIMS[1], HDIMS[0]), dtype=jnp.float32)
    wr = stdr * jax.random.normal(k3, (1, HDIMS[1]), dtype=jnp.float32)
    return w1, w2, wr


def reference_forward(x, w1, w2, wr):
    """Pure-JAX reference of the PyTorch forward (unpadded weights)."""
    def abrelu(h):
        return B_CONST * jnp.minimum(h, 0.0) + jnp.maximum(h, 0.0)
    h = abrelu(x @ w1.T)
    h = abrelu(h @ w2.T)
    return jnp.squeeze(h @ wr.T, -1)


if __name__ == "__main__":
    key = jax.random.PRNGKey(0)
    kx, kp = jax.random.split(key)
    w1, w2, wr = init_params(kp)
    w1p, w2p, wrp = prepare_params(w1, w2, wr)  # one-time, outside hot path

    # small batch: single tile
    x = jax.random.normal(kx, (BATCH, INP_DIM), dtype=jnp.float32)
    y = jax.block_until_ready(densenet2_forward(x, w1p, w2p, wrp))
    y_ref = reference_forward(x, w1, w2, wr)
    assert y.shape == (BATCH,)
    assert jnp.allclose(y, y_ref, atol=1e-5, rtol=1e-5)

    # larger ragged batch: exercises multi-step grid + partial last block
    x2 = jax.random.normal(kx, (300, INP_DIM), dtype=jnp.float32)
    y2 = jax.block_until_ready(densenet2_forward(x2, w1p, w2p, wrp, block_b=128))
    y2_ref = reference_forward(x2, w1, w2, wr)
    assert y2.shape == (300,)
    assert jnp.allclose(y2, y2_ref, atol=1e-5, rtol=1e-5)

    print("KERNEL_OK")
</pallas_src>

<mosaic_0001>
module attributes {stable_mosaic.version = 11 : i64} {
  func.func @densenet2_kernel(%arg0: i32, %arg1: memref<8x32xf32, #tpu.memory_space<vmem>>, %arg2: memref<32x128xf32, #tpu.memory_space<vmem>>, %arg3: memref<128x128xf32, #tpu.memory_space<vmem>>, %arg4: memref<1x128xf32, #tpu.memory_space<vmem>>, %arg5: memref<1x1x8xf32, #tpu.memory_space<vmem>>) attributes {dimension_semantics = [#tpu.dimension_semantics<parallel>], iteration_bounds = array<i64: 1>, scalar_prefetch = 0 : i64, scratch_operands = 0 : i64, tpu.core_type = #tpu.core_type<tc>, window_params = [{transform_indices = @transform_0, window_bounds = array<i64: 8, 32>}, {pipeline_mode = #tpu.pipeline_mode<synchronous>, transform_indices = @transform_1, window_bounds = array<i64: 32, 128>}, {pipeline_mode = #tpu.pipeline_mode<synchronous>, transform_indices = @transform_2, window_bounds = array<i64: 128, 128>}, {pipeline_mode = #tpu.pipeline_mode<synchronous>, transform_indices = @transform_3, window_bounds = array<i64: 1, 128>}, {transform_indices = @transform_4, window_bounds = array<i64: 1, 1, 8>}]} {
    %c0 = arith.constant 0 : index
    %c0_0 = arith.constant 0 : index
    %0 = vector.load %arg1[%c0, %c0_0] : memref<8x32xf32, #tpu.memory_space<vmem>>, vector<8x32xf32>
    %c0_1 = arith.constant 0 : index
    %c0_2 = arith.constant 0 : index
    %1 = vector.load %arg2[%c0_1, %c0_2] : memref<32x128xf32, #tpu.memory_space<vmem>>, vector<32x128xf32>
    %cst = arith.constant dense<0.000000e+00> : vector<8x128xf32>
    %2 = tpu.matmul %0, %1, %cst {dimension_numbers = #tpu.dot_dimension_numbers<[1], [0], [0], [1], [0, 0, 1, 1], [], []>} : vector<8x32xf32>, vector<32x128xf32>, vector<8x128xf32> -> vector<8x128xf32>
    %cst_3 = arith.constant 0.000000e+00 : f32
    %3 = vector.broadcast %cst_3 : f32 to vector<8x128xf32>
    %4 = arith.cmpf ogt, %2, %3 : vector<8x128xf32>
    %cst_4 = arith.constant -0.267949194 : f32
    %5 = vector.broadcast %cst_4 : f32 to vector<8x128xf32>
    %6 = arith.mulf %5, %2 : vector<8x128xf32>
    %7 = arith.select %4, %2, %6 : vector<8x128xi1>, vector<8x128xf32>
    %c0_5 = arith.constant 0 : index
    %c0_6 = arith.constant 0 : index
    %8 = vector.load %arg3[%c0_5, %c0_6] : memref<128x128xf32, #tpu.memory_space<vmem>>, vector<128x128xf32>
    %cst_7 = arith.constant dense<0.000000e+00> : vector<8x128xf32>
    %9 = tpu.matmul %7, %8, %cst_7 {dimension_numbers = #tpu.dot_dimension_numbers<[1], [0], [0], [1], [0, 0, 1, 1], [], []>} : vector<8x128xf32>, vector<128x128xf32>, vector<8x128xf32> -> vector<8x128xf32>
    %cst_8 = arith.constant 0.000000e+00 : f32
    %10 = vector.broadcast %cst_8 : f32 to vector<8x128xf32>
    %11 = arith.cmpf ogt, %9, %10 : vector<8x128xf32>
    %cst_9 = arith.constant -0.267949194 : f32
    %12 = vector.broadcast %cst_9 : f32 to vector<8x128xf32>
    %13 = arith.mulf %12, %9 : vector<8x128xf32>
    %14 = arith.select %11, %9, %13 : vector<8x128xi1>, vector<8x128xf32>
    %c0_10 = arith.constant 0 : index
    %c0_11 = arith.constant 0 : index
    %15 = vector.load %arg4[%c0_10, %c0_11] : memref<1x128xf32, #tpu.memory_space<vmem>>, vector<1x128xf32>
    %cst_12 = arith.constant dense<0.000000e+00> : vector<1x8xf32>
    %16 = tpu.matmul %15, %14, %cst_12 {dimension_numbers = #tpu.dot_dimension_numbers<[1], [1], [0], [0], [0, 0, 1, 0], [], []>} : vector<1x128xf32>, vector<8x128xf32>, vector<1x8xf32> -> vector<1x8xf32>
    %c0_13 = arith.constant 0 : index
    %c0_14 = arith.constant 0 : index
    %c0_15 = arith.constant 0 : index
    %17 = vector.load %arg5[%c0_13, %c0_14, %c0_15] : memref<1x1x8xf32, #tpu.memory_space<vmem>>, vector<1x1x8xf32>
    %18 = vector.shape_cast %17 : vector<1x1x8xf32> to vector<1x8xf32>
    %19 = vector.shape_cast %16 : vector<1x8xf32> to vector<1x1x8xf32>
    tpu.vector_store %arg5[%c0_13, %c0_14, %c0_15], %19 {strides = array<i32>} : memref<1x1x8xf32, #tpu.memory_space<vmem>>, vector<1x1x8xf32>,
    return
  }
  func.func @transform_0(%arg0: i32) -> (i32, i32) {
    %c0_i32 = arith.constant 0 : i32
    %c0_i32_0 = arith.constant 0 : i32
    return %arg0, %c0_i32 : i32, i32
  }
  func.func @transform_1(%arg0: i32) -> (i32, i32) {
    %c0_i32 = arith.constant 0 : i32
    %c0_i32_0 = arith.constant 0 : i32
    %c0_i32_1 = arith.constant 0 : i32
    return %c0_i32, %c0_i32_0 : i32, i32
  }
  func.func @transform_2(%arg0: i32) -> (i32, i32) {
    %c0_i32 = arith.constant 0 : i32
    %c0_i32_0 = arith.constant 0 : i32
    %c0_i32_1 = arith.constant 0 : i32
    return %c0_i32, %c0_i32_0 : i32, i32
  }
  func.func @transform_3(%arg0: i32) -> (i32, i32) {
    %c0_i32 = arith.constant 0 : i32
    %c0_i32_0 = arith.constant 0 : i32
    %c0_i32_1 = arith.constant 0 : i32
    return %c0_i32, %c0_i32_0 : i32, i32
  }
  func.func @transform_4(%arg0: i32) -> (i32, i32, i32) {
    %c0_i32 = arith.constant 0 : i32
    %c0_i32_0 = arith.constant 0 : i32
    %c0_i32_1 = arith.constant 0 : i32
    return %arg0, %c0_i32, %c0_i32_0 : i32, i32, i32
  }
}

</mosaic_0001>

<bundles_post_ra>
// kernel: tpu_custom_call.1
= control target key start
LH: loop header
LB: loop body
LE: loop exit
PB: predicated region body
PF: predicated region fallthrough
CT: control target
= control target key end

     0   :  { %9 = vsyncpa [#allocation3], 0  ;;  %s620_s0 = inlined_call_operand.hbm [shape: f32[8,32], index: 0, kind: input, shape index: {}]   ;;  %s621_s1 = inlined_call_operand.hbm [shape: f32[32,128], index: 1, kind: input, shape index: {}]   ;;  %s622_s2 = inlined_call_operand.hbm [shape: f32[128,128], index: 2, kind: input, shape index: {}]   ;;  %s623_s3 = inlined_call_operand.vmem [shape: f32[1,128], index: 3, kind: input, shape index: {}]   ;;  %s624_s4 = inlined_call_operand.hbm [shape: f32[1,1,8], index: 4, kind: output, shape index: {}]  }
   0x1   :  { %10 = vsyncpa [#allocation6], 0 }
   0x2   :  { %11 = vsyncpa [#allocation4], 0  ;;  %s526_s15 = smov [#allocation5]   ;;  %s432_s19 = scalar_lea.hbm %s621_s1, 512 }
   0x3   :  { %s27_s16 = sshll.u32 %s526_s15, 4  ;;  %p433_p0 = scmp.ne.s32.totalorder %s621_s1, %s432_s19  ;;  %s28_s16 = int_to_ptr.vmem [resolvable:$true] %s27_s16 }
   0x4   :  { %p436_p1 = scmp.lt.u32.totalorder %s432_s19, %s621_s1 }
   0x6   :  { %p438_p2 = pnand %p436_p1, %p433_p0 }
   0x8   :  { %441 = shalt.err (!%p438_p2)
}
   0x9   :  { %s442_s24 = scalar_lea.vmem %s28_s16, 512  ;;  %p447_p4 = scmp.lt.s32.totalorder %s28_s16, %s28_s16 }
   0xa   :  { %p443_p3 = scmp.ne.s32.totalorder %s28_s16, %s442_s24  ;;  %p448_p5 = scmp.lt.s32.totalorder %s442_s24, %s442_s24 }
   0xc   :  { %p449_p6 = por %p448_p5, %p447_p4 }
   0xe   :  { %p450_p7 = pnand %p449_p6, %p443_p3 }
  0x10   :  { %453 = shalt.err (!%p450_p7)
}
  0x11   :  { %s527_s25 = smov 128   ;;  %s528_s26 = smov 8  }
  0x12   :  { %33 = dma.hbm_to_vmem [thread:$0]  %s621_s1, 512, %s28_s16, [#allocation6], %s527_s25, %s527_s25, %s528_s26  }
  0x13   :  { %s529_s29 = smov [#allocation2]   ;;  %s530_s5 = smov [#allocation7]  }
  0x14   :  { %s18_s30 = sshll.u32 %s529_s29, 4  ;;  %s39_s6 = sshll.u32 %s530_s5, 4  ;;  %s19_s30 = int_to_ptr.vmem [resolvable:$true] %s18_s30  ;;  %s40_s6 = int_to_ptr.vmem [resolvable:$true] %s39_s6 }
  0x15   :  { %s454_s9 = scalar_lea.hbm %s620_s0, 128 }
  0x16   :  { %p455_p8 = scmp.ne.s32.totalorder %s620_s0, %s454_s9  ;;  %p458_p9 = scmp.lt.u32.totalorder %s454_s9, %s620_s0 }
  0x18   :  { %p460_p10 = pnand %p458_p9, %p455_p8 }
  0x1a   :  { %463 = shalt.err (!%p460_p10)
}
  0x1b   :  { %s464_s1 = scalar_lea.vmem %s19_s30, 128  ;;  %p469_p12 = scmp.lt.s32.totalorder %s19_s30, %s19_s30 }
  0x1c   :  { %p465_p11 = scmp.ne.s32.totalorder %s19_s30, %s464_s1  ;;  %p470_p13 = scmp.lt.s32.totalorder %s464_s1, %s464_s1 }
  0x1e   :  { %p471_p0 = por %p470_p13, %p469_p12 }
  0x20   :  { %p472_p1 = pnand %p471_p0, %p465_p11 }
  0x22   :  { %475 = shalt.err (!%p472_p1)
}
  0x23   :  { %21 = dma.hbm_to_vmem [thread:$0]  %s620_s0, 128, %s19_s30, [#allocation3]  }
  0x24   :  { %s476_s18 = scalar_lea.hbm %s622_s2, 2048 }
  0x25   :  { %p477_p2 = scmp.ne.s32.totalorder %s622_s2, %s476_s18  ;;  %p480_p3 = scmp.lt.u32.totalorder %s476_s18, %s622_s2 }
  0x27   :  { %p482_p4 = pnand %p480_p3, %p477_p2 }
  0x29   :  { %485 = shalt.err (!%p482_p4)
}
  0x2a   :  { %s486_s23 = scalar_lea.vmem %s40_s6, 2048  ;;  %p491_p6 = scmp.lt.s32.totalorder %s40_s6, %s40_s6 }
  0x2b   :  { %p487_p5 = scmp.ne.s32.totalorder %s40_s6, %s486_s23  ;;  %p492_p7 = scmp.lt.s32.totalorder %s486_s23, %s486_s23 }
  0x2d   :  { %p493_p8 = por %p492_p7, %p491_p6 }
  0x2f   :  { %p494_p9 = pnand %p493_p8, %p487_p5 }
  0x31   :  { %497 = shalt.err (!%p494_p9)
}
  0x32   :  { %45 = dma.hbm_to_vmem [thread:$0]  %s622_s2, 2048, %s40_s6, [#allocation6], %s527_s25, %s527_s25, %s528_s26  }
  0x33   :  { %520 = dma.done.wait [#allocation3], 128  }
  0x34   :  { %521 = vsyncadd [#allocation3], 4294967168 }
  0x35   :  { %522 = dma.done.wait [#allocation6], 2560  }
  0x36   :  { %523 = vsyncadd [#allocation6], 4294964736  ;;  %v531_v0 = vmov 0.0|0.0   ;;  %vm532_vm0 = vmmov 0   ;;  %v533_v1 = vmov 0.0   ;;  %v58_v2 = vld [vmem:[#allocation5] sm:$0xff] }
  0x37   :  { %393 = vmatprep.subr.bf16.mxu0 %v531_v0  ;;  %350 = vmatprep.mubr.msk.f32.mxu0 %vm532_vm0, %v533_v1  ;;  %v59_v3 = vld [vmem:[#allocation5 + $0x8] sm:$0xff]  ;;  %v60_v4 = vld [vmem:[#allocation5 + $0x10] sm:$0xff]  ;;  %v61_v6 = vld [vmem:[#allocation5 + $0x18] sm:$0xff]  ;;  %vm62_vm1 = vcmask 261120   ;;  %s534_s26 = smov [#allocation8]   ;;  %vm299_vm4 = vcmask 57344  }
  0x38   :  { %399 = vmatprep.subr.bf16.mxu1 %v531_v0  ;;  %385 = vmatprep.mubr.msk.f32.mxu1 %vm532_vm0, %v533_v1  ;;  %v394_v5 = vpack.c.bf16 %v59_v3, %v58_v2  ;;  %v139_v7 = vld [vmem:[#allocation7] sm:$0xff]  ;;  %v140_v8 = vld [vmem:[#allocation7 + $0x8] sm:$0xff]  ;;  %v141_v9 = vld [vmem:[#allocation7 + $0x10] sm:$0xff]  ;;  %v397_v11 = vpack.c.bf16 %v61_v6, %v60_v4  ;;  %s307_s27 = sshll.u32 %s534_s26, 4  ;;  %s308_s27 = int_to_ptr.vmem [resolvable:$true] %s307_s27 }
  0x39   :  { %v142_v10 = vld [vmem:[#allocation7 + $0x18] sm:$0xff]  ;;  %v400_v12 = vpack.c.bf16 %v140_v8, %v139_v7  ;;  %v143_v14 = vld [vmem:[#allocation7 + $0x20] sm:$0xff]  ;;  %v144_v15 = vld [vmem:[#allocation7 + $0x28] sm:$0xff]  ;;  %s498_s28 = scalar_lea.vmem %s308_s27, 16  ;;  %s502_s29 = scalar_lea.vmem %s308_s27, 32 }
  0x3a   :  { %395 = vmatpush3.bf16.msra.mxu0 %v394_v5  ;;  %v403_v13 = vpack.c.bf16 %v142_v10, %v141_v9  ;;  %v57_v16 = vld [vmem:[#allocation2] sm:$0xff]  ;;  %v406_v17 = vpack.c.bf16 %v144_v15, %v143_v14  ;;  %v145_v18 = vld [vmem:[#allocation7 + $0x30] sm:$0xff]  ;;  %v147_v21 = vld [vmem:[#allocation7 + $0x40] sm:$0xff]  ;;  %p499_p10 = scmp.ne.s32.totalorder %s308_s27, %s498_s28  ;;  %p503_p11 = scmp.lt.s32.totalorder %s308_s27, %s308_s27 }
  0x3b   :  { %396 = vmatprep.subr.bf16.mxu0 %v531_v0  ;;  %401 = vmatpush3.bf16.msra.mxu1 %v400_v12  ;;  %v146_v19 = vld [vmem:[#allocation7 + $0x38] sm:$0xff]  ;;  %v148_v22 = vld [vmem:[#allocation7 + $0x48] sm:$0xff]  ;;  %v149_v24 = vld [vmem:[#allocation7 + $0x50] sm:$0xff]  ;;  %p504_p12 = scmp.lt.s32.totalorder %s502_s29, %s498_s28 }
  0x3c   :  { %402 = vmatprep.subr.bf16.mxu1 %v531_v0  ;;  %v409_v20 = vpack.c.bf16 %v146_v19, %v145_v18  ;;  %v412_v23 = vpack.c.bf16 %v148_v22, %v147_v21  ;;  %v150_v25 = vld [vmem:[#allocation7 + $0x58] sm:$0xff]  ;;  %v151_v27 = vld [vmem:[#allocation7 + $0x60] sm:$0xff]  ;;  %v152_v28 = vld [vmem:[#allocation7 + $0x68] sm:$0xff] }
  0x3d   :  { %v415_v26 = vpack.c.bf16 %v150_v25, %v149_v24  ;;  %v418_v29 = vpack.c.bf16 %v152_v28, %v151_v27  ;;  %v153_v30 = vld [vmem:[#allocation7 + $0x70] sm:$0xff]  ;;  %v154_v31 = vld [vmem:[#allocation7 + $0x78] sm:$0xff]  ;;  %p505_p13 = por %p504_p12, %p503_p11 }
  0x3e   :  { %398 = vmatpush3.bf16.msra.mxu0 %v397_v11  ;;  %v421_v32 = vpack.c.bf16 %v154_v31, %v153_v30  ;;  %v228_v41 = vld [vmem:[%s623_s3] sm:$0x1] }
  0x3f   :  { %388 = vmatprep.subr.mxu0 %v533_v1  ;;  %404 = vmatpush3.bf16.msra.mxu1 %v403_v13  ;;  %p506_p0 = pnand %p505_p13, %p499_p10 }
  0x40   :  { %405 = vmatprep.subr.bf16.mxu1 %v531_v0 }
  0x41   :  { %351 = vmatmul.mubr.msk.f32.vlgmr.msra.gmra.mrb[0].mxu0 %vm62_vm1, %v57_v16 }
  0x42   :  { %390 = vmatprep.mubr.msk.f32.mxu0 %vm532_vm0, %v533_v1 }
  0x43   :  { %407 = vmatpush3.bf16.msra.mxu1 %v406_v17 }
  0x44   :  { %408 = vmatprep.subr.bf16.mxu1 %v531_v0 }
  0x47   :  { %410 = vmatpush3.bf16.msra.mxu1 %v409_v20 }
  0x48   :  { %411 = vmatprep.subr.bf16.mxu1 %v531_v0 }
  0x4b   :  { %413 = vmatpush3.bf16.msra.mxu1 %v412_v23 }
  0x4c   :  { %414 = vmatprep.subr.bf16.mxu1 %v531_v0 }
  0x4f   :  { %416 = vmatpush3.bf16.msra.mxu1 %v415_v26 }
  0x50   :  { %417 = vmatprep.subr.bf16.mxu1 %v531_v0 }
  0x53   :  { %419 = vmatpush3.bf16.msra.mxu1 %v418_v29 }
  0x54   :  { %420 = vmatprep.subr.bf16.mxu1 %v531_v0 }
  0x57   :  { %422 = vmatpush3.bf16.msra.mxu1 %v421_v32 }
 0x114   :  { %v132_v33 = vpop.f32.mrb[0].mxu0 }
 0x115   :  { %vm136_vm2 = vcmp.gt.f32.partialorder %v132_v33, 0.0  ;;  %v137_v34 = vmul.f32 -0.2679492, %v132_v33  ;;  %v352_v35 = vpop.f32.mrb[1].mxu0 }
 0x117   :  { %v138_v36 = vsel %vm136_vm2, %v132_v33, %v137_v34 }
 0x118   :  { %386 = vmatmul.mubr.f32.vlgmr.msra.gmra.mrb[0].mxu1 %v138_v36 }
 0x1eb   :  { %v221_v37 = vpop.f32.mrb[0].mxu1 }
 0x1ec   :  { %vm225_vm3 = vcmp.gt.f32.partialorder %v221_v37, 0.0  ;;  %v226_v38 = vmul.f32 -0.2679492, %v221_v37  ;;  %v387_v39 = vpop.f32.mrb[1].mxu1 }
 0x1ee   :  { %v227_v40 = vsel %vm225_vm3, %v221_v37, %v226_v38 }
 0x1ef   :  { %389 = vmatpush3.xpose.msra.mxu0 %v227_v40 }
 0x1f2   :  { %391 = vmatmul.mubr.f32.vlgmr.msra.gmra.mrb[2].mxu0 %v228_v41 }
 0x2c5   :  { %v295_v42 = vpop.f32.mrb[2].mxu0 }
 0x2c6   :  { %v392_v43 = vpop.f32.mrb[3].mxu0  ;;  %300 = vst.msk [vmem:[#allocation8] sm:$0x1] %vm299_vm4, %v295_v42 }
 0x2c7   :  { %509 = shalt.err (!%p506_p0)
}
 0x2c8   :  { %s510_s3 = scalar_lea.hbm %s624_s4, 16 }
 0x2c9   :  { %p511_p1 = scmp.ne.s32.totalorder %s624_s4, %s510_s3  ;;  %p514_p2 = scmp.lt.u32.totalorder %s510_s3, %s624_s4 }
 0x2cb   :  { %p516_p3 = pnand %p514_p2, %p511_p1 }
 0x2cd   :  { %519 = shalt.err (!%p516_p3)
}
 0x2ce   :  { %310 = dma.vmem_to_hbm [thread:$0]  %s308_s27, 16, %s624_s4, [#allocation4]  }
 0x2cf   :  { %524 = dma.done.wait [#allocation4], 16  }
 0x2d0   :  { %525 = vsyncadd [#allocation4], 4294967280 }
 0x2d1   :  { %314 = vsyncpa [#allocation3], 1 }
 0x2d2   :  { %315 = vsyncpa [#allocation6], 1 }
 0x2d3   :  { %316 = vsyncpa [#allocation4], 1 }

</bundles_post_ra>
